<compile_context>
chip_gen: v7x
topology: tpu7x:2x2x1
jax: 0.10.0
libtpu: 0.0.40
codegen_flags: <defaults>
</compile_context>

<pallas_src>
import math
import functools

import jax
import jax.numpy as jnp
from jax.experimental import pallas as pl
from jax.experimental.pallas import tpu as pltpu


# ---------------------------------------------------------------------------
# Glue: build the pe buffer exactly like the PyTorch __init__ (max_len, d_model)
# Store it pre-cast to the activation dtype so the forward never pays a cast.
# ---------------------------------------------------------------------------
def make_pe_table(max_len: int, d_model: int, dtype=jnp.float32):
    position = jnp.arange(max_len, dtype=jnp.float32)[:, None]          # (max_len, 1)
    div_term = jnp.exp(
        jnp.arange(0, d_model, 2, dtype=jnp.float32) * (-math.log(10000.0) / d_model)
    )                                                                   # (d_model/2,)
    pe = jnp.zeros((max_len, d_model), dtype=jnp.float32)
    pe = pe.at[:, 0::2].set(jnp.sin(position * div_term))
    pe = pe.at[:, 1::2].set(jnp.cos(position * div_term))
    return pe.astype(dtype)


# ---------------------------------------------------------------------------
# Kernels
# ---------------------------------------------------------------------------
def _bcast_pe(pe_block, batch_repeat):
    """Broadcast a (ts, D) pe block against the x block.

    batch_repeat=None -> x block is (ts, B, D): broadcast over the batch axis.
    batch_repeat=B    -> x block is (ts, B*D) (lane-dense layout): replicate
                         the D lanes B times with a static concat (XLU work,
                         free filler in this HBM-bandwidth-bound kernel).
    """
    if batch_repeat is None:
        return pe_block[:, None, :]
    if batch_repeat == 1:
        return pe_block
    return jnp.concatenate([pe_block] * batch_repeat, axis=-1)


def _pe_add_kernel(x_ref, pe_ref, o_ref, *, batch_repeat):
    # Eval mode / p == 0: y = x + pe.
    o_ref[...] = (x_ref[...] + _bcast_pe(pe_ref[...], batch_repeat)).astype(o_ref.dtype)


def _pe_add_dropout_hw_kernel(seed_ref, x_ref, pe_ref, o_ref, *,
                              threshold, scale, batch_repeat):
    # Training mode on TPU: in-kernel hardware PRNG, integer-threshold keep test.
    # TODO(synk): RNG stream is the TPU hardware PRNG, not bit-identical to
    # torch's dropout mask; semantics (keep-prob 1-p, scale 1/(1-p)) match.
    y = x_ref[...] + _bcast_pe(pe_ref[...], batch_repeat)
    pltpu.prng_seed(seed_ref[0], pl.program_id(0))
    bits = pltpu.bitcast(pltpu.prng_random_bits(y.shape), jnp.uint32)
    keep = bits >= jnp.uint32(threshold)          # P(keep) = 1 - p
    o_ref[...] = jnp.where(keep, y * scale, 0.0).astype(o_ref.dtype)


def _pe_add_dropout_bits_kernel(x_ref, pe_ref, bits_ref, o_ref, *,
                                threshold, scale, batch_repeat):
    # Training mode fallback (non-TPU backend): random bits streamed in.
    y = x_ref[...] + _bcast_pe(pe_ref[...], batch_repeat)
    keep = bits_ref[...] >= jnp.uint32(threshold)
    o_ref[...] = jnp.where(keep, y * scale, 0.0).astype(o_ref.dtype)


# ---------------------------------------------------------------------------
# Tiling: ~4 MiB x blocks, budget-checked against the (generation-aware)
# scoped-VMEM limit for ALL double-buffered big streams.
# ---------------------------------------------------------------------------
_TARGET_BLOCK_BYTES = 4 * 1024 * 1024


def _scoped_vmem_limit_bytes():
    """~half of physical VMEM, capped at 64 MiB.
    v5e/v6e: 128 MiB physical -> 64 MiB scoped; v7x: 64 MiB -> 32 MiB."""
    try:
        cap = int(pltpu.get_tpu_info().vmem_capacity_bytes)
    except Exception:
        cap = 128 * 1024 * 1024
    return int(min(max(cap // 2, 16 * 1024 * 1024), 64 * 1024 * 1024))


def _auto_seq_tile(S, row_bytes, n_big_streams, vmem_limit_bytes):
    """Largest seq tile such that the x block is ~_TARGET_BLOCK_BYTES and the
    double-buffered big streams (x, out, [bits]) fit in ~half the scoped VMEM.
    Rounded down to a multiple of 8; the ragged last grid block is masked by
    Pallas, so ts does NOT need to divide S."""
    row_bytes = max(1, row_bytes)
    target_rows = max(1, _TARGET_BLOCK_BYTES // row_bytes)
    budget_rows = max(1, (vmem_limit_bytes // 2) // (2 * n_big_streams * row_bytes))
    ts = min(S, target_rows, budget_rows)
    if ts >= 8:
        ts = (ts // 8) * 8
    return max(1, ts)


# ---------------------------------------------------------------------------
# Wrapper
# ---------------------------------------------------------------------------
def positional_encoding_forward(x, pe_table, *, p=0.2, training=False, seed=0,
                                seq_tile=None):
    """y = dropout(x + pe[:S]).  x: (S, B, D); pe_table: (max_len, D), pre-cast.

    `seed` must be changed every training step or the dropout mask repeats.
    """
    S, B, D = x.shape
    assert pe_table.shape[0] >= S and pe_table.shape[1] == D

    if pe_table.dtype != x.dtype:
        # Safety net only; store the table pre-cast to avoid this per-call op.
        pe_table = pe_table.astype(x.dtype)

    apply_dropout = bool(training) and float(p) > 0.0
    if apply_dropout and float(p) >= 1.0:
        return jnp.zeros_like(x)                      # everything dropped

    # Lane-dense layout: when d_model is not a multiple of 128, merge the
    # contiguous (B, D) trailing dims so the store lane width is B*D.
    flatten = (D % 128 != 0)
    if flatten:
        x_op = x.reshape(S, B * D)                    # free reshape (contiguous dims)
        x_block = lambda ts: (ts, B * D)
        batch_repeat = B
        xm0 = lambda i: (i, 0)
        xm1 = lambda i, _s: (i, 0)
        out_struct = jax.ShapeDtypeStruct((S, B * D), x.dtype)
    else:
        x_op = x
        x_block = lambda ts: (ts, B, D)
        batch_repeat = None
        xm0 = lambda i: (i, 0, 0)
        xm1 = lambda i, _s: (i, 0, 0)
        out_struct = jax.ShapeDtypeStruct((S, B, D), x.dtype)
    pm0 = lambda i: (i, 0)
    pm1 = lambda i, _s: (i, 0)

    on_tpu = jax.default_backend() == "tpu"
    n_big = 2 if (not apply_dropout or on_tpu) else 3   # x + out (+ streamed bits)
    vmem_limit = _scoped_vmem_limit_bytes()

    if seq_tile is None:
        ts = _auto_seq_tile(S, B * D * x.dtype.itemsize, n_big, vmem_limit)
    else:
        ts = int(seq_tile)
    ts = max(1, min(ts, S))
    grid = (pl.cdiv(S, ts),)        # ragged last block handled by Pallas masking

    cparams = pltpu.CompilerParams(
        dimension_semantics=("parallel",),            # independent seq blocks
        vmem_limit_bytes=vmem_limit,
    )
    xb = x_block(ts)
    pb = (ts, D)

    if not apply_dropout:
        kernel = functools.partial(_pe_add_kernel, batch_repeat=batch_repeat)
        out = pl.pallas_call(
            kernel,
            out_shape=out_struct,
            grid_spec=pltpu.PrefetchScalarGridSpec(
                num_scalar_prefetch=0,
                grid=grid,
                in_specs=[pl.BlockSpec(xb, xm0),      # x tile
                          pl.BlockSpec(pb, pm0)],     # pe tile (full table operand)
                out_specs=pl.BlockSpec(xb, xm0),
            ),
            compiler_params=cparams,
        )(x_op, pe_table)
        return out.reshape(S, B, D) if flatten else out

    # Dropout path: keep iff bits >= p * 2^32 (single uint compare per elem).
    threshold = min(int(round(float(p) * 2.0 ** 32)), 2 ** 32 - 1)
    scale = 1.0 / (1.0 - float(p))

    if on_tpu:
        seed_arr = jnp.asarray([seed], dtype=jnp.int32)
        kernel = functools.partial(_pe_add_dropout_hw_kernel,
                                   threshold=threshold, scale=scale,
                                   batch_repeat=batch_repeat)
        out = pl.pallas_call(
            kernel,
            out_shape=out_struct,
            grid_spec=pltpu.PrefetchScalarGridSpec(
                num_scalar_prefetch=1,                # seed lives in SMEM
                grid=grid,
                in_specs=[pl.BlockSpec(xb, xm1),
                          pl.BlockSpec(pb, pm1)],
                out_specs=pl.BlockSpec(xb, xm1),
            ),
            compiler_params=cparams,
        )(seed_arr, x_op, pe_table)
        return out.reshape(S, B, D) if flatten else out

    # Non-TPU backend (e.g. CPU): pltpu PRNG primitives have no CPU lowering,
    # so sample the bits with jax.random and stream them in (never on TPU --
    # that would add 4 B/elem of HBM read to a bandwidth-bound kernel).
    bits = jax.random.bits(jax.random.PRNGKey(seed), x_op.shape, dtype=jnp.uint32)
    kernel = functools.partial(_pe_add_dropout_bits_kernel,
                               threshold=threshold, scale=scale,
                               batch_repeat=batch_repeat)
    out = pl.pallas_call(
        kernel,
        out_shape=out_struct,
        grid_spec=pltpu.PrefetchScalarGridSpec(
            num_scalar_prefetch=0,
            grid=grid,
            in_specs=[pl.BlockSpec(xb, xm0),          # x tile
                      pl.BlockSpec(pb, pm0),          # pe tile
                      pl.BlockSpec(xb, xm0)],         # bits tile
            out_specs=pl.BlockSpec(xb, xm0),
        ),
        compiler_params=cparams,
    )(x_op, pe_table, bits)
    return out.reshape(S, B, D) if flatten else out


# ---------------------------------------------------------------------------
# Demo / self-check
# ---------------------------------------------------------------------------
if __name__ == "__main__":
    P_DROP = 0.2
    MAX_LEN = 64
    key = jax.random.PRNGKey(0)

    # --- Case 1: d_model NOT a multiple of 128 -> lane-dense flattened layout.
    #     S=12 with auto tile (8) also exercises the ragged last grid block.
    S, B, D = 12, 2, 32
    x = jax.random.normal(key, (S, B, D), dtype=jnp.float32)
    pe_table = make_pe_table(MAX_LEN, D, dtype=x.dtype)   # built once, pre-cast
    ref = x + pe_table[:S][:, None, :]

    y_eval = jax.block_until_ready(
        positional_encoding_forward(x, pe_table, p=P_DROP, training=False))
    assert jnp.allclose(y_eval, ref, atol=1e-6), "eval-mode mismatch (flatten path)"

    # Training mode: every element must be either dropped (exactly 0) or
    # kept-and-scaled by 1/(1-p).
    y_train = jax.block_until_ready(
        positional_encoding_forward(x, pe_table, p=P_DROP, training=True, seed=42))
    assert y_train.shape == (S, B, D)
    assert bool(jnp.all(jnp.isfinite(y_train)))
    scaled = ref / (1.0 - P_DROP)
    ok = jnp.isclose(y_train, scaled, rtol=1e-5, atol=1e-5) | (y_train == 0.0)
    assert bool(jnp.all(ok)), "training-mode values are neither kept-and-scaled nor dropped"

    # --- Case 2: d_model = 128 -> native (S, B, D) layout (no flatten).
    S2, B2, D2 = 12, 2, 128
    x2 = jax.random.normal(jax.random.PRNGKey(1), (S2, B2, D2), dtype=jnp.float32)
    pe_table2 = make_pe_table(MAX_LEN, D2, dtype=x2.dtype)
    ref2 = x2 + pe_table2[:S2][:, None, :]

    y2 = jax.block_until_ready(
        positional_encoding_forward(x2, pe_table2, p=P_DROP, training=False))
    assert jnp.allclose(y2, ref2, atol=1e-6), "eval-mode mismatch (3-D path)"

    # Explicit multi-step grid on the 3-D path (exercise pipelining).
    y2_tiled = jax.block_until_ready(
        positional_encoding_forward(x2, pe_table2, p=P_DROP, training=False, seq_tile=8))
    assert jnp.allclose(y2_tiled, ref2, atol=1e-6), "tiled eval-mode mismatch (3-D path)"

    print("KERNEL_OK")
</pallas_src>

<mosaic_0001>
module attributes {stable_mosaic.version = 11 : i64} {
  func.func @_pe_add_kernel(%arg0: i32, %arg1: memref<8x64xf32, #tpu.memory_space<vmem>>, %arg2: memref<8x32xf32, #tpu.memory_space<vmem>>, %arg3: memref<8x64xf32, #tpu.memory_space<vmem>>) attributes {dimension_semantics = [#tpu.dimension_semantics<parallel>], iteration_bounds = array<i64: 2>, scalar_prefetch = 0 : i64, scratch_operands = 0 : i64, tpu.core_type = #tpu.core_type<tc>, window_params = [{transform_indices = @transform_0, window_bounds = array<i64: 8, 64>}, {transform_indices = @transform_1, window_bounds = array<i64: 8, 32>}, {transform_indices = @transform_2, window_bounds = array<i64: 8, 64>}]} {
    %c0 = arith.constant 0 : index
    %c0_0 = arith.constant 0 : index
    %0 = vector.load %arg1[%c0, %c0_0] : memref<8x64xf32, #tpu.memory_space<vmem>>, vector<8x64xf32>
    %c0_1 = arith.constant 0 : index
    %c0_2 = arith.constant 0 : index
    %1 = vector.load %arg2[%c0_1, %c0_2] : memref<8x32xf32, #tpu.memory_space<vmem>>, vector<8x32xf32>
    %2 = tpu.concatenate %1, %1 in 1 : vector<8x32xf32>, vector<8x32xf32> -> vector<8x64xf32>
    %3 = arith.addf %0, %2 : vector<8x64xf32>
    %c0_3 = arith.constant 0 : index
    %c0_4 = arith.constant 0 : index
    %4 = vector.load %arg3[%c0_3, %c0_4] : memref<8x64xf32, #tpu.memory_space<vmem>>, vector<8x64xf32>
    tpu.vector_store %arg3[%c0_3, %c0_4], %3 {strides = array<i32>} : memref<8x64xf32, #tpu.memory_space<vmem>>, vector<8x64xf32>,
    return
  }
  func.func @transform_0(%arg0: i32) -> (i32, i32) {
    %c0_i32 = arith.constant 0 : i32
    %c0_i32_0 = arith.constant 0 : i32
    return %arg0, %c0_i32 : i32, i32
  }
  func.func @transform_1(%arg0: i32) -> (i32, i32) {
    %c0_i32 = arith.constant 0 : i32
    %c0_i32_0 = arith.constant 0 : i32
    return %arg0, %c0_i32 : i32, i32
  }
  func.func @transform_2(%arg0: i32) -> (i32, i32) {
    %c0_i32 = arith.constant 0 : i32
    %c0_i32_0 = arith.constant 0 : i32
    return %arg0, %c0_i32 : i32, i32
  }
}

</mosaic_0001>

<bundles_post_ra>
// kernel: tpu_custom_call.1
= control target key start
LH: loop header
LB: loop body
LE: loop exit
PB: predicated region body
PF: predicated region fallthrough
CT: control target
= control target key end

     0   :  { %7 = vsyncpa [#allocation3], 0  ;;  %s741_s0 = inlined_call_operand.hbm [shape: f32[12,64], index: 0, kind: input, shape index: {}]   ;;  %s742_s1 = inlined_call_operand.hbm [shape: f32[64,32], index: 1, kind: input, shape index: {}]   ;;  %s743_s2 = inlined_call_operand.hbm [shape: f32[12,64], index: 2, kind: output, shape index: {}]  }
   0x1   :  { %9 = vsyncpa [#allocation3 + $0x1], 0 }
   0x2   :  { %10 = vsyncpa [#allocation6], 0 }
   0x3   :  { %12 = vsyncpa [#allocation6 + $0x1], 0 }
   0x4   :  { %13 = vsyncpa [#allocation4], 0 }
   0x5   :  { %15 = vsyncpa [#allocation4 + $0x1], 0  ;;  %s532_s9 = smov 0   ;;  %s534_s10 = smov 0  }
   0x6   :  { %s536_s11 = smov 0   ;;  %s538_s12 = smov 0  }
   0x7 LB: > { %s553_s13 = sadd.s32 4294967295, %s511_s12   ;;  %s314_s14 = sadd.s32 4294967294, %s511_s12   ;;  %s511_s12 = sphi %s538_s12, %s762_s12   ;;  %s507_s11 = sphi %s536_s11, %s761_s11   ;;  %s503_s10 = sphi %s534_s10, %s760_s10   ;;  %s499_s9 = sphi %s532_s9, %s759_s9  }
   0x8   : > { %s557_s15 = sadd.s32 1, %s511_s12   ;;  %s28_s16 = sadd.s32 1, %s507_s11 }
   0x9   : > { %s25_s17 = ssub.s32 %s511_s12, %s557_s15  ;;  %p35_p0 = scmp.ne.s32.totalorder %s507_s11, %s503_s10 }
   0xa   : > { %p26_p1 = scmp.eq.s32.totalorder %s25_s17, 0  ;;  %p36_p2 = scmp.eq.s32.totalorder %s511_s12, 0 }
   0xb   : > { %p41_p3 = scmp.ne.s32.totalorder %s503_s10, %s499_s9  ;;  %p42_p4 = scmp.eq.s32.totalorder %s553_s13, 0 }
   0xc   : > { %s569_s18 = scalar_select %p26_p1, %s507_s11, %s28_s16  }
   0xd   : > { %p571_p5 = por %p36_p2, %p35_p0  ;;  %p575_p6 = por %p42_p4, %p41_p3 }
   0xe   : > { %p91_p7 = scmp.eq.s32.totalorder %s553_s13, 1  ;;  %p97_p8 = scmp.eq.s32.totalorder %s314_s14, 1 }
   0xf   : > { %s747_s20 = scalar_select %p575_p6, 1, 0 }
  0x10   : > { %p346_p10 = scmp.lt.s32.totalorder %s511_s12, 2  ;;  %p582_p11 = por %p91_p7, %p35_p0 }
  0x11   : > { %p586_p12 = por %p97_p8, %p41_p3  ;;  %s591_s23 = sand.u32 1, %s507_s11  }
  0x12   : > { %s748_s21 = scalar_select %p582_p11, 1, 0 }
  0x13   : > { %s749_s22 = scalar_select %p586_p12, 1, 0 }
  0x14   : > { %s318_s24 = sshll.u32 %s511_s12, 7  ;;  %s317_s25 = sshll.u32 %s591_s23, 3 }
  0x15   : > { %s600_s28 = scalar_lea.hbm %s741_s0, %s318_s24  ;;  %s121_s29 = scalar_lea.vmem [#allocation2], %s317_s25 }
  0x16   : > { %s128_s30 = sshll.u32 %s121_s29, 4  ;;  %p606_p13 = pnand %p346_p10, %p571_p5  ;;  %s610_s30 = int_to_ptr.vmem [resolvable:$true] %s128_s30 }
  0x17   : > { %s118_s4 = scalar_lea.sflag [#allocation3], %s591_s23  ;;  %s381_s5 = scalar_lea.hbm %s600_s28, 128 }
  0x18   : > { %p382_p2 = scmp.ne.s32.totalorder %s600_s28, %s381_s5  ;;  %p383_p3 = pneg %p606_p13 }
  0x19   : > { %s386_s8 = scalar_lea.hbm %s741_s0, 256  ;;  %p387_p5 = scmp.lt.u32.totalorder %s600_s28, %s741_s0 }
  0x1a   : > { %p384_p4 = pnand %p383_p3, %p382_p2  ;;  %p388_p8 = scmp.lt.u32.totalorder %s386_s8, %s381_s5 }
  0x1b   : > { %p390_p9 = scmp.lt.u32.totalorder %s381_s5, %s600_s28 }
  0x1c   : > { %p385_p7 = pneg %p384_p4  ;;  %p389_p10 = por %p388_p8, %p387_p5 }
  0x1e   : > { %p391_p0 = por %p390_p9, %p389_p10 }
  0x20   : > { %p392_p1 = pnand %p391_p0, %p385_p7 }
  0x22   : > { %395 = shalt.err (!%p392_p1)
}
  0x23   : > { %s396_s17 = scalar_lea.vmem %s610_s30, 128  ;;  %s513_s19 = smov [#allocation2]  }
  0x24   : > { %p397_p2 = scmp.ne.s32.totalorder %s610_s30, %s396_s17  ;;  %s401_s26 = sshll.u32 %s513_s19, 4  ;;  %s402_s26 = int_to_ptr.vmem [resolvable:$false] %s401_s26 }
  0x25   : > { %s403_s27 = scalar_lea.vmem %s402_s26, 256  ;;  %p404_p11 = scmp.lt.s32.totalorder %s610_s30, %s402_s26 }
  0x26   : > { %p399_p4 = pnand %p397_p2, %p383_p3  ;;  %p405_p5 = scmp.lt.s32.totalorder %s403_s27, %s396_s17 }
  0x28   : > { %p400_p12 = pneg %p399_p4  ;;  %p406_p8 = por %p405_p5, %p404_p11 }
  0x2a   : > { %p407_p9 = pnand %p406_p8, %p400_p12 }
  0x2c   : > { %410 = shalt.err (!%p407_p9)
}
  0x2d   : > { %338 = dma.hbm_to_vmem [thread:$0]  (!%p606_p13), %s600_s28, 128, %s610_s30, %s118_s4  }
  0x2e   : > { %p751_p0 = scmp.lt.s32.totalorder %s511_s12, 3  ;;  %p752_p1 = scmp.ge.s32.totalorder %s511_s12, 1 }
  0x2f   : > { %s653_s7 = scalar_lea.hbm %s742_s1, %s318_s24  ;;  %s139_s8 = scalar_lea.vmem [#allocation5], %s317_s25 }
  0x30   : > { %p644_p7 = pnand %p752_p1, %p751_p0  ;;  %s146_s14 = sshll.u32 %s139_s8, 4  ;;  %s147_s14 = int_to_ptr.vmem [resolvable:$true] %s146_s14 }
  0x31   : > { %s136_s28 = scalar_lea.sflag [#allocation6], %s591_s23  ;;  %s411_s30 = scalar_lea.hbm %s653_s7, 128 }
  0x32   : > { %s753_s29 = scalar_select %p644_p7, 1, 0 }
  0x33   : > { %p412_p11 = scmp.ne.s32.totalorder %s653_s7, %s411_s30  ;;  %s416_s24 = scalar_lea.hbm %s742_s1, 1024 }
  0x34   : > { %p417_p2 = scmp.lt.u32.totalorder %s653_s7, %s742_s1  ;;  %p418_p4 = scmp.lt.u32.totalorder %s416_s24, %s411_s30 }
  0x35   : > { %p414_p12 = pnand %p412_p11, %p383_p3  ;;  %p420_p8 = scmp.lt.u32.totalorder %s411_s30, %s653_s7 }
  0x36   : > { %p419_p5 = por %p418_p4, %p417_p2 }
  0x37   : > { %p415_p10 = pneg %p414_p12 }
  0x38   : > { %p421_p9 = por %p420_p8, %p419_p5 }
  0x3a   : > { %p422_p0 = pnand %p421_p9, %p415_p10 }
  0x3c   : > { %425 = shalt.err (!%p422_p0)
}
  0x3d   : > { %s426_s23 = scalar_lea.vmem %s147_s14, 128  ;;  %s514_s25 = smov [#allocation5]  }
  0x3e   : > { %p427_p1 = scmp.ne.s32.totalorder %s147_s14, %s426_s23  ;;  %s431_s26 = sshll.u32 %s514_s25, 4  ;;  %s432_s26 = int_to_ptr.vmem [resolvable:$false] %s431_s26 }
  0x3f   : > { %s433_s27 = scalar_lea.vmem %s432_s26, 256  ;;  %p434_p6 = scmp.lt.s32.totalorder %s147_s14, %s432_s26 }
  0x40   : > { %p429_p11 = pnand %p427_p1, %p383_p3  ;;  %p435_p7 = scmp.lt.s32.totalorder %s433_s27, %s426_s23 }
  0x42   : > { %p430_p12 = pneg %p429_p11  ;;  %p436_p2 = por %p435_p7, %p434_p6 }
  0x44   : > { %p437_p4 = pnand %p436_p2, %p430_p12 }
  0x46   : > { %440 = shalt.err (!%p437_p4)
}
  0x47   : > { %341 = dma.hbm_to_vmem [thread:$0]  (!%p606_p13), %s653_s7, 128, %s147_s14, %s136_s28  }
  0x48   : > { %p754_p10 = scmp.ne.s32.totalorder %s753_s29, 0 }
  0x49   : > { %s680_s5 = sand.u32 (!%p754_p10), 1, %s503_s10   ;;  %p755_p3 = scmp.ne.s32.totalorder (!%p754_p10), %s747_s20, 0 }
  0x4a   : > { %155 = sbr.rel (%p754_p10) target bundleno = 217 (0xd9), region = 28  ;;  %s322_s6 = sshll.u32 (!%p754_p10), %s680_s5, 3 }
  0x4b   : > { %s158_s8 = scalar_lea.sflag (!%p754_p10), [#allocation3], %s680_s5  ;;  %s161_s30 = scalar_lea.vmem (!%p754_p10), [#allocation2], %s322_s6 }
  0x51   : > { %486 = dma.done.wait (%p755_p3), %s158_s8, 128  }
  0x52   : > { %488 = vsyncadd (%p755_p3), %s158_s8, 4294967168  ;;  %s167_s3 = scalar_lea.sflag [#allocation6], %s680_s5  ;;  %s170_s7 = scalar_lea.vmem [#allocation5], %s322_s6 }
  0x53   : > { %490 = dma.done.wait (%p755_p3), %s167_s3, 128  }
  0x54   : > { %492 = vsyncadd (%p755_p3), %s167_s3, 4294967168  ;;  %v197_v0 = vld [vmem:[%s170_s7] sm:$0xff]  ;;  %s515_s29 = smov 32   ;;  %vm202_vm0 = vcmask 261120   ;;  %v196_v1 = vld [vmem:[%s161_s30] sm:$0xff]  ;;  %s326_s14 = sshll.u32 %s553_s13, 7 }
  0x55   : > { %199 = vrot.lane.b32.xlu0 %v197_v0, %s515_s29  ;;  %s195_s28 = scalar_lea.vmem [#allocation7], %s322_s6  ;;  %vm205_vm1 = vcmask 523264   ;;  %s697_s20 = scalar_lea.hbm %s743_s2, %s326_s14 }
  0x56   : > { %s221_s4 = sshll.u32 %s195_s28, 4  ;;  %s208_s17 = scalar_lea.sflag [#allocation4], %s680_s5  ;;  %s699_s4 = int_to_ptr.vmem [resolvable:$true] %s221_s4 }
  0x57   : > { %s441_s19 = scalar_lea.vmem %s699_s4, 128  ;;  %p756_p13 = scmp.ne.s32.totalorder %s748_s21, 0 }
  0x58   : > { %p442_p6 = scmp.ne.s32.totalorder %s699_s4, %s441_s19  ;;  %s516_s13 = smov [#allocation7]  }
  0x59   : > { %s445_s23 = sshll.u32 %s516_s13, 4  ;;  %s446_s23 = int_to_ptr.vmem [resolvable:$false] %s445_s23 }
  0x5a   : > { %p443_p7 = pnand %p442_p6, %p756_p13  ;;  %s447_s25 = scalar_lea.vmem %s446_s23, 256 }
  0x5b   : > { %p448_p8 = scmp.lt.s32.totalorder %s699_s4, %s446_s23  ;;  %p449_p9 = scmp.lt.s32.totalorder %s447_s25, %s441_s19 }
  0x5c   : > { %p444_p5 = pneg %p443_p7 }
  0x5d   : > { %p450_p0 = por %p449_p9, %p448_p8 }
  0x5f   : > { %p451_p1 = pnand %p450_p0, %p444_p5 }
  0xc7   : > { %v200_v2 = vpop.permute.xlu0 %199 }
  0xc8   : > { %v203_v3 = vsel %vm202_vm0, %v197_v0, %v200_v2 }
  0xc9   : > { %v204_v4 = vadd.f32 %v203_v3, %v196_v1 }
  0xcb   : > { %206 = vst.msk [vmem:[%s195_s28] sm:$0xff] %vm205_vm1, %v204_v4 }
  0xcc   : > { %454 = shalt.err (!%p451_p1)
}
  0xcd   : > { %s455_s26 = scalar_lea.hbm %s697_s20, 128  ;;  %s459_s6 = scalar_lea.hbm %s743_s2, 256 }
  0xce   : > { %p456_p11 = scmp.ne.s32.totalorder %s697_s20, %s455_s26  ;;  %p460_p4 = scmp.lt.u32.totalorder %s697_s20, %s743_s2 }
  0xcf   : > { %p461_p10 = scmp.lt.u32.totalorder %s459_s6, %s455_s26  ;;  %p463_p6 = scmp.lt.u32.totalorder %s455_s26, %s697_s20 }
  0xd0   : > { %p457_p12 = pnand %p456_p11, %p756_p13 }
  0xd1   : > { %p462_p3 = por %p461_p10, %p460_p4 }
  0xd2   : > { %p458_p2 = pneg %p457_p12 }
  0xd3   : > { %p464_p7 = por %p463_p6, %p462_p3 }
  0xd5   : > { %p465_p5 = pnand %p464_p7, %p458_p2 }
  0xd7   : > { %468 = shalt.err (!%p465_p5)
}
  0xd8   : > { %333 = dma.vmem_to_hbm [thread:$0]  (%p756_p13), %s699_s4, 128, %s697_s20, %s208_s17  }
  0xd9 PF: > { %s233_s3 = sand.u32 1, %s499_s9   ;;  %p757_p8 = scmp.ne.s32.totalorder %s749_s22, 0 }
  0xda   : > { %p758_p9 = scmp.ge.s32.totalorder %s511_s12, 2  ;;  %s234_s7 = scalar_lea.sflag [#allocation4], %s233_s3 }
  0xdc   : > { %p343_p0 = pnand %p758_p9, %p757_p8 }
  0xde   : > { %494 = dma.done.wait (!%p343_p0), %s234_s7, 128  }
  0xdf   : > { %496 = vsyncadd (!%p343_p0), %s234_s7, 4294967168  ;;  %p18_p1 = scmp.ge.s32.totalorder %s557_s15, 4   ;;  %s759_s9 = smov %s503_s10 }
  0xe0   : > { %s760_s10 = smov %s507_s11  ;;  %s761_s11 = smov %s569_s18 }
  0xe1   : > { %s762_s12 = smov %s557_s15  ;;  %20 = sbr.rel (!%p18_p1) target bundleno = 7 (0x7), region = 86 }
  0xe8   :  { %239 = vsyncpa [#allocation3], 1 }
  0xe9   :  { %241 = vsyncpa [#allocation3 + $0x1], 1 }
  0xea   :  { %242 = vsyncpa [#allocation6], 1 }
  0xeb   :  { %244 = vsyncpa [#allocation6 + $0x1], 1 }
  0xec   :  { %245 = vsyncpa [#allocation4], 1 }
  0xed   :  { %247 = vsyncpa [#allocation4 + $0x1], 1 }

</bundles_post_ra>
